<compile_context>
chip_gen: v6e
topology: v6e:2x2x1
jax: 0.10.0
libtpu: 0.0.40
codegen_flags: <defaults>
</compile_context>

<pallas_src>
import jax
import jax.numpy as jnp
from jax.experimental import pallas as pl
from jax.experimental.pallas import tpu as pltpu


def _concat_rows_kernel(states_ref, actions_ref, out_ref):
    # states_ref: (TM, D_obs), actions_ref: (TM, D_act), out_ref: (TM, D_obs + D_act).
    # Cast in-kernel (free on the idle VPU), build the full output row once in registers,
    # then issue a single full-width store.
    s = states_ref[...].astype(out_ref.dtype)
    a = actions_ref[...].astype(out_ref.dtype)
    out_ref[...] = jnp.concatenate([s, a], axis=-1)


def _choose_row_tile(rows: int, bytes_per_row: int, itemsize: int) -> int:
    """Row tile: whole array for small inputs (single grid step), else a large
    sublane-aligned tile whose double-buffered in+out blocks stay well inside the
    default scoped VMEM limit on every TPU generation (v5e/v6e/v7x)."""
    # Sublane alignment per element size (f32: 8, bf16: 16, int8/fp8: 32).
    align = {4: 8, 2: 16, 1: 32}.get(itemsize, 8)
    if rows <= 1024:
        # Legal via the "block == full array dim" exception; no row padding/masking
        # and zero extra grid steps for tiny inputs.
        return rows
    budget = 12 * 1024 * 1024  # double-buffered blocks fit even v5e's 16 MiB default
    tm = min(1024, budget // max(1, 2 * bytes_per_row))
    tm = max(align, (tm // align) * align)
    return tm


def state_action_embedding(states: jax.Array, actions: jax.Array) -> jax.Array:
    """Pallas implementation of StateActionEmbedding.forward (concat along dim=2)."""
    assert states.ndim == 3 and actions.ndim == 3
    assert states.shape[:2] == actions.shape[:2]
    B, P, d_obs = states.shape
    d_act = actions.shape[-1]
    d_out = d_obs + d_act
    out_dtype = jnp.promote_types(states.dtype, actions.dtype)
    out_itemsize = jnp.dtype(out_dtype).itemsize

    rows = B * P
    # Collapsing contiguous leading dims is a free (metadata-only) reshape.
    s2 = states.reshape(rows, d_obs)
    a2 = actions.reshape(rows, d_act)

    bytes_per_row = (d_obs * s2.dtype.itemsize
                     + d_act * a2.dtype.itemsize
                     + d_out * out_itemsize)
    tm = _choose_row_tile(rows, bytes_per_row, out_itemsize)
    grid = (pl.cdiv(rows, tm),)

    bytes_accessed = (s2.size * s2.dtype.itemsize
                      + a2.size * a2.dtype.itemsize
                      + rows * d_out * out_itemsize)

    out2 = pl.pallas_call(
        _concat_rows_kernel,
        out_shape=jax.ShapeDtypeStruct((rows, d_out), out_dtype),
        grid_spec=pltpu.PrefetchScalarGridSpec(
            num_scalar_prefetch=0,
            grid=grid,
            in_specs=[
                pl.BlockSpec((tm, d_obs), lambda i: (i, 0)),
                pl.BlockSpec((tm, d_act), lambda i: (i, 0)),
            ],
            out_specs=pl.BlockSpec((tm, d_out), lambda i: (i, 0)),
        ),
        compiler_params=pltpu.CompilerParams(
            # Row-tile axis is independent -> megacore-shardable on v7x (2 TCs).
            dimension_semantics=("parallel",),
        ),
        cost_estimate=pl.CostEstimate(
            flops=0, transcendentals=0, bytes_accessed=bytes_accessed),
    )(s2, a2)

    return out2.reshape(B, P, d_out)


if __name__ == "__main__":
    # Small shapes consistent with the module:
    #   num_state_action_pairs P = 8, flattened obs features = 16,
    #   flattened action features = 4, batch = 2.
    B, P, D_OBS, D_ACT = 2, 8, 16, 4

    key = jax.random.PRNGKey(0)
    k_s, k_a = jax.random.split(key)
    states = jax.random.normal(k_s, (B, P, D_OBS), dtype=jnp.float32)
    actions = jax.random.normal(k_a, (B, P, D_ACT), dtype=jnp.float32)

    out = state_action_embedding(states, actions)
    out = jax.block_until_ready(out)

    # Reference: plain JAX concat (same semantics as torch.cat(dim=2)).
    ref = jnp.concatenate([states, actions], axis=2)
    assert out.shape == (B, P, D_OBS + D_ACT), out.shape
    assert jnp.array_equal(out, ref), "Pallas concat mismatch vs reference"

    # Module's embedding_size property: P * (prod(obs_shape) + prod(action_shape)).
    assert P * (D_OBS + D_ACT) == out.shape[1] * out.shape[2]

    print("KERNEL_OK")
</pallas_src>

<mosaic_0001>
module attributes {stable_mosaic.version = 11 : i64} {
  func.func @_concat_rows_kernel(%arg0: i32, %arg1: memref<16x16xf32, #tpu.memory_space<vmem>>, %arg2: memref<16x4xf32, #tpu.memory_space<vmem>>, %arg3: memref<16x20xf32, #tpu.memory_space<vmem>>) attributes {dimension_semantics = [#tpu.dimension_semantics<parallel>], iteration_bounds = array<i64: 1>, scalar_prefetch = 0 : i64, scratch_operands = 0 : i64, tpu.core_type = #tpu.core_type<tc>, window_params = [{transform_indices = @transform_0, window_bounds = array<i64: 16, 16>}, {transform_indices = @transform_1, window_bounds = array<i64: 16, 4>}, {transform_indices = @transform_2, window_bounds = array<i64: 16, 20>}]} {
    %c0 = arith.constant 0 : index
    %c0_0 = arith.constant 0 : index
    %0 = vector.load %arg1[%c0, %c0_0] : memref<16x16xf32, #tpu.memory_space<vmem>>, vector<16x16xf32>
    %c0_1 = arith.constant 0 : index
    %c0_2 = arith.constant 0 : index
    %1 = vector.load %arg2[%c0_1, %c0_2] : memref<16x4xf32, #tpu.memory_space<vmem>>, vector<16x4xf32>
    %2 = tpu.concatenate %0, %1 in 1 : vector<16x16xf32>, vector<16x4xf32> -> vector<16x20xf32>
    %c0_3 = arith.constant 0 : index
    %c0_4 = arith.constant 0 : index
    %3 = vector.load %arg3[%c0_3, %c0_4] : memref<16x20xf32, #tpu.memory_space<vmem>>, vector<16x20xf32>
    tpu.vector_store %arg3[%c0_3, %c0_4], %2 {strides = array<i32>} : memref<16x20xf32, #tpu.memory_space<vmem>>, vector<16x20xf32>,
    return
  }
  func.func @transform_0(%arg0: i32) -> (i32, i32) {
    %c0_i32 = arith.constant 0 : i32
    %c0_i32_0 = arith.constant 0 : i32
    return %arg0, %c0_i32 : i32, i32
  }
  func.func @transform_1(%arg0: i32) -> (i32, i32) {
    %c0_i32 = arith.constant 0 : i32
    %c0_i32_0 = arith.constant 0 : i32
    return %arg0, %c0_i32 : i32, i32
  }
  func.func @transform_2(%arg0: i32) -> (i32, i32) {
    %c0_i32 = arith.constant 0 : i32
    %c0_i32_0 = arith.constant 0 : i32
    return %arg0, %c0_i32 : i32, i32
  }
}

</mosaic_0001>

<bundles_post_ra>
// kernel: tpu_custom_call.1
= control target key start
LH: loop header
LB: loop body
LE: loop exit
PB: predicated region body
PF: predicated region fallthrough
CT: control target
= control target key end

     0   :  { %s72_s11 = smov 16   ;;  %s106_s0 = inlined_call_operand.vmem [shape: f32[16,16], index: 0, kind: input, shape index: {}]   ;;  %s107_s1 = inlined_call_operand.vmem [shape: f32[16,4], index: 1, kind: input, shape index: {}]   ;;  %s108_s2 = inlined_call_operand.hbm [shape: f32[16,20], index: 2, kind: output, shape index: {}]  }
   0x1   :  { %v14_v0 = vld [vmem:[%s107_s1] sm:$0xff] }
   0x2   :  { %18 = vrot.lane.b32.xlu0 %v14_v0, %s72_s11 }
   0x3   :  { %7 = vsyncpa [#allocation3], 0  ;;  %v15_v1 = vld [vmem:[%s107_s1 + $0x8] sm:$0xff]  ;;  %vm24_vm0 = vcmask 130048   ;;  %v12_v2 = vld [vmem:[%s106_s0] sm:$0xff]  ;;  %vm27_vm1 = vcmask 162816  }
   0x4   :  { %s73_s16 = smov [#allocation2]   ;;  %v13_v5 = vld [vmem:[%s106_s0 + $0x8] sm:$0xff] }
   0x5   :  { %s35_s17 = sshll.u32 %s73_s16, 4  ;;  %s36_s17 = int_to_ptr.vmem [resolvable:$true] %s35_s17 }
   0x6   :  { %20 = vrot.lane.b32.xlu0 %v15_v1, %s72_s11  ;;  %s50_s1 = scalar_lea.vmem %s36_s17, 256  ;;  %p55_p1 = scmp.lt.s32.totalorder %s36_s17, %s36_s17 }
   0x7   :  { %p51_p0 = scmp.ne.s32.totalorder %s36_s17, %s50_s1  ;;  %p56_p2 = scmp.lt.s32.totalorder %s50_s1, %s50_s1 }
   0x9   :  { %p57_p3 = por %p56_p2, %p55_p1 }
   0xb   :  { %p58_p4 = pnand %p57_p3, %p51_p0 }
  0x74   :  { %v19_v3 = vpop.permute.xlu0 %18 }
  0x75   :  { %v25_v4 = vsel %vm24_vm0, %v12_v2, %v19_v3 }
  0x76   :  { %28 = vst.msk [vmem:[#allocation2] sm:$0xff] %vm27_vm1, %v25_v4 }
  0x78   :  { %v21_v6 = vpop.permute.xlu0 %20 }
  0x79   :  { %v26_v7 = vsel %vm24_vm0, %v13_v5, %v21_v6 }
  0x7a   :  { %29 = vst.msk [vmem:[#allocation2 + $0x8] sm:$0xff] %vm27_vm1, %v26_v7 }
  0x7b   :  { %61 = shalt.err (!%p58_p4)
}
  0x7c   :  { %s74_s20 = smov 128   ;;  %s75_s21 = smov 8  }
  0x7d   :  { %41 = dma.vmem_to_hbm [thread:$0]  %s36_s17, 256, %s108_s2, [#allocation3], %s74_s20, %s74_s20, %s75_s21  }
  0x7e   :  { %70 = dma.done.wait [#allocation3], 256  }
  0x7f   :  { %71 = vsyncadd [#allocation3], 4294967040 }
  0x80   :  { %45 = vsyncpa [#allocation3], 1 }

</bundles_post_ra>
